<compile_context>
chip_gen: v5e
topology: v5e:2x2
jax: 0.10.0
libtpu: 0.0.40
codegen_flags: <defaults>
</compile_context>

<pallas_src>
import jax
import jax.numpy as jnp
from jax.experimental import pallas as pl
from jax.experimental.pallas import tpu as pltpu

# ---- model hyper-parameters (match heatTherapyModel defaults) ----------------
NUM_TEMPERATURES = 1
NUM_LOSSES = 3
NUM_TEMP_BINS = 11
NUM_LOSS_BINS = 101
NUM_INPUT_TEMP_FEATURES = NUM_TEMPERATURES + NUM_LOSSES                        # 4
NUM_INPUT_LOSS_FEATURES = NUM_TEMPERATURES * (NUM_TEMP_BINS + 1) + NUM_LOSSES  # 15
NUM_SHARED_TEMP_FEATURES = NUM_TEMP_BINS * 2                                   # 22
NUM_SHARED_LOSS_FEATURES = NUM_LOSSES * 2                                      # 6

LANE = 128
TEMP_PAD = LANE                       # temp head: 11  -> 128 lanes (lane-dense store)
LOSS_PAD = LANE                       # loss head: 101 -> 128 lanes (lane-dense store)
LOSS_FUSED = NUM_LOSSES * LOSS_PAD    # 384: all 3 loss heads fused into one matmul
NEG_INF = -1e30                       # pad-lane bias -> softmax prob exactly 0

# Batch tile: >=512 rows reaches ~85% of HBM roofline; 1024 keeps the
# double-buffered working set comfortably inside v7x's 64 MiB VMEM.
MAX_BATCH_TILE = 1024


def _softmax_lanes(logits):
    """Row softmax over the 128-lane axis; padded lanes carry -1e30 bias -> prob 0."""
    m = jnp.max(logits, axis=-1, keepdims=True)
    e = jnp.exp(logits - m)
    s = jnp.sum(e, axis=-1, keepdims=True)
    return e * pl.reciprocal(s, approx=True)


def heat_therapy_kernel(
    x_ref,          # [TB, 4]
    w1_ref,         # [4, 22]    shared temp feature extraction
    b1_ref,         # [1, 22]
    wt_ref,         # [22, 128]  temp head, cols 11..127 zero
    bt_ref,         # [1, 128]   cols 11..127 = -1e30
    w2t_ref,        # [128, 6]   loss-feature weights for the temp-prob part (rows 11..127 zero)
    w2x_ref,        # [4, 6]     loss-feature weights for the raw-state part
    b2_ref,         # [1, 6]
    wl_ref,         # [6, 384]   3 fused loss heads, 128-lane segments, pad cols zero
    bl_ref,         # [1, 384]   pad lanes = -1e30
    temp_out_ref,   # [TB, 128]
    loss_out_ref,   # [3, TB, 128]
):
    x = x_ref[...]                                                        # [TB, 4]

    # --- shared temperature feature extraction: Linear(4->22) + ReLU ----------
    h1 = jnp.dot(x, w1_ref[...], preferred_element_type=jnp.float32) + b1_ref[...]
    h1 = jnp.maximum(h1, 0.0)                                             # [TB, 22]

    # --- temperature head: Linear(22->11, lane-padded to 128) + Softmax -------
    logits_t = jnp.dot(h1, wt_ref[...], preferred_element_type=jnp.float32) + bt_ref[...]
    temps = _softmax_lanes(logits_t)                                      # [TB, 128], pad lanes == 0
    temp_out_ref[...] = temps                                             # single lane-dense store

    # --- nextPatientStates = concat([temps, x]) -> Linear(15->6) + ReLU -------
    # No in-kernel concat: the 15-wide matmul is split into (temps @ w2_temp) +
    # (x @ w2_x); the split/padding is done once in the wrapper.
    h2 = (jnp.dot(temps, w2t_ref[...], preferred_element_type=jnp.float32)
          + jnp.dot(x, w2x_ref[...], preferred_element_type=jnp.float32)
          + b2_ref[...])
    h2 = jnp.maximum(h2, 0.0)                                             # [TB, 6]

    # --- 3 loss heads fused into ONE matmul: Linear(6 -> 3*128) ---------------
    logits_l = jnp.dot(h2, wl_ref[...], preferred_element_type=jnp.float32) + bl_ref[...]
    for i in range(NUM_LOSSES):                                           # static unroll (3)
        seg = logits_l[:, i * LOSS_PAD:(i + 1) * LOSS_PAD]                # 128-aligned lane slice
        loss_out_ref[i, :, :] = _softmax_lanes(seg)                       # lane-dense stores


def _prepare_params(params):
    """Pad / fuse / pre-split weights in the wrapper (tiny one-off XLA ops)."""
    # temperature head padded 11 -> 128
    wt_pad = jnp.zeros((NUM_SHARED_TEMP_FEATURES, TEMP_PAD), jnp.float32)
    wt_pad = wt_pad.at[:, :NUM_TEMP_BINS].set(params["wt"])
    bt_pad = jnp.full((1, TEMP_PAD), NEG_INF, jnp.float32)
    bt_pad = bt_pad.at[:, :NUM_TEMP_BINS].set(params["bt"])

    # pre-split w2 (15 -> 6): rows 0..10 act on the temp probs, rows 11..14 on x
    w2 = params["w2"]
    w2t_pad = jnp.zeros((TEMP_PAD, NUM_SHARED_LOSS_FEATURES), jnp.float32)
    w2t_pad = w2t_pad.at[:NUM_TEMP_BINS, :].set(w2[:NUM_TEMP_BINS, :])
    w2x = w2[NUM_TEMP_BINS:, :]

    # fuse the 3 loss heads into one [6, 384] matrix of 128-lane segments
    wl_f = jnp.zeros((NUM_SHARED_LOSS_FEATURES, LOSS_FUSED), jnp.float32)
    bl_f = jnp.full((1, LOSS_FUSED), NEG_INF, jnp.float32)
    for i in range(NUM_LOSSES):
        lo = i * LOSS_PAD
        wl_f = wl_f.at[:, lo:lo + NUM_LOSS_BINS].set(params["wl"][i])
        bl_f = bl_f.at[:, lo:lo + NUM_LOSS_BINS].set(params["bl"][i])

    return (params["w1"], params["b1"], wt_pad, bt_pad,
            w2t_pad, w2x, params["b2"], wl_f, bl_f)


@jax.jit
def heat_therapy_forward(initial_patient_states, params):
    """Mirrors heatTherapyModel.forward. Returns ((1,B,11), (3,B,101)) float32."""
    x = initial_patient_states
    if x.ndim == 1:
        x = x[None, :]
    assert x.ndim == 2, "Input tensor must have 2 dimensions."
    assert x.shape[1] == NUM_INPUT_TEMP_FEATURES, "Input tensor must have 4 features."
    x = x.astype(jnp.float32)
    batch = x.shape[0]

    # Batch tile: full batch if small, else 1024-row tiles (partial tail tile is
    # handled by Pallas; all compute here is row-wise so garbage tail rows are safe).
    tile_b = batch if batch <= MAX_BATCH_TILE else MAX_BATCH_TILE
    grid = (pl.cdiv(batch, tile_b),)

    prepped = _prepare_params(params)

    def const_spec(a):
        nd = a.ndim
        return pl.BlockSpec(a.shape, lambda i, _nd=nd: (0,) * _nd)  # fixed block -> VMEM-resident

    in_specs = [pl.BlockSpec((tile_b, NUM_INPUT_TEMP_FEATURES), lambda i: (i, 0))]
    in_specs += [const_spec(a) for a in prepped]

    # advisory cost estimate for XLA scheduling
    flops = 2 * batch * (NUM_INPUT_TEMP_FEATURES * NUM_SHARED_TEMP_FEATURES
                         + NUM_SHARED_TEMP_FEATURES * TEMP_PAD
                         + TEMP_PAD * NUM_SHARED_LOSS_FEATURES
                         + NUM_INPUT_TEMP_FEATURES * NUM_SHARED_LOSS_FEATURES
                         + NUM_SHARED_LOSS_FEATURES * LOSS_FUSED)
    transcendentals = batch * (TEMP_PAD + LOSS_FUSED + 1 + NUM_LOSSES)
    weight_bytes = int(sum(a.size * a.dtype.itemsize for a in prepped))
    bytes_accessed = batch * 4 * (NUM_INPUT_TEMP_FEATURES + TEMP_PAD + LOSS_FUSED) + weight_bytes

    temp_padded, loss_padded = pl.pallas_call(
        heat_therapy_kernel,
        out_shape=(
            jax.ShapeDtypeStruct((batch, TEMP_PAD), jnp.float32),
            jax.ShapeDtypeStruct((NUM_LOSSES, batch, LOSS_PAD), jnp.float32),
        ),
        grid=grid,
        in_specs=in_specs,
        out_specs=(
            pl.BlockSpec((tile_b, TEMP_PAD), lambda i: (i, 0)),
            pl.BlockSpec((NUM_LOSSES, tile_b, LOSS_PAD), lambda i: (0, i, 0)),
        ),
        compiler_params=pltpu.CompilerParams(
            dimension_semantics=("parallel",),          # batch tiles shard over v7x's 2 TCs
            vmem_limit_bytes=32 * 1024 * 1024,
        ),
        cost_estimate=pl.CostEstimate(
            flops=int(flops),
            transcendentals=int(transcendentals),
            bytes_accessed=int(bytes_accessed),
        ),
    )(x, *prepped)

    # strip lane padding / add the size-1 temperature axis in the wrapper
    temp_pred = temp_padded[:, :NUM_TEMP_BINS][None]          # (1, B, 11)
    loss_pred = loss_padded[:, :, :NUM_LOSS_BINS]             # (3, B, 101)
    return temp_pred, loss_pred


def init_params(key):
    """Deterministic synthetic parameters with shapes implied by the module."""
    ks = jax.random.split(key, 8)

    def lin(k, fan_in, fan_out):
        scale = 1.0 / jnp.sqrt(jnp.float32(fan_in))
        return jax.random.uniform(k, (fan_in, fan_out), jnp.float32, -scale, scale)

    return {
        # sharedModelWeights.sharedTempFeatureExtraction: 4 -> 22
        "w1": lin(ks[0], NUM_INPUT_TEMP_FEATURES, NUM_SHARED_TEMP_FEATURES),
        "b1": jax.random.uniform(ks[1], (1, NUM_SHARED_TEMP_FEATURES), jnp.float32, -0.5, 0.5),
        # specificModelWeights.predictNextTemperature: 22 -> 11 (numTemperatures == 1)
        "wt": lin(ks[2], NUM_SHARED_TEMP_FEATURES, NUM_TEMP_BINS),
        "bt": jax.random.uniform(ks[3], (1, NUM_TEMP_BINS), jnp.float32, -0.5, 0.5),
        # sharedModelWeights.sharedLossFeatureExtraction: 15 -> 6
        "w2": lin(ks[4], NUM_INPUT_LOSS_FEATURES, NUM_SHARED_LOSS_FEATURES),
        "b2": jax.random.uniform(ks[5], (1, NUM_SHARED_LOSS_FEATURES), jnp.float32, -0.5, 0.5),
        # specificModelWeights.predictNextLoss: 3 heads, 6 -> 101
        "wl": jax.random.uniform(
            ks[6], (NUM_LOSSES, NUM_SHARED_LOSS_FEATURES, NUM_LOSS_BINS),
            jnp.float32, -1.0 / jnp.sqrt(6.0), 1.0 / jnp.sqrt(6.0)),
        "bl": jax.random.uniform(ks[7], (NUM_LOSSES, 1, NUM_LOSS_BINS), jnp.float32, -0.5, 0.5),
    }


def _reference_forward(x, params):
    """Pure-JAX reference of the same math (for a correctness sanity check)."""
    h1 = jnp.maximum(x @ params["w1"] + params["b1"], 0.0)
    temps = jax.nn.softmax(h1 @ params["wt"] + params["bt"], axis=-1)
    temp_pred = temps[None]
    nxt = jnp.concatenate([temps, x], axis=1)
    h2 = jnp.maximum(nxt @ params["w2"] + params["b2"], 0.0)
    loss_pred = jnp.stack(
        [jax.nn.softmax(h2 @ params["wl"][i] + params["bl"][i], axis=-1)
         for i in range(NUM_LOSSES)], axis=0)
    return temp_pred, loss_pred


def _check(batch, key, params):
    x = jax.random.normal(key, (batch, NUM_INPUT_TEMP_FEATURES), jnp.float32)
    temp_pred, loss_pred = heat_therapy_forward(x, params)
    jax.block_until_ready((temp_pred, loss_pred))

    assert temp_pred.shape == (NUM_TEMPERATURES, batch, NUM_TEMP_BINS), temp_pred.shape
    assert loss_pred.shape == (NUM_LOSSES, batch, NUM_LOSS_BINS), loss_pred.shape

    ref_t, ref_l = _reference_forward(x, params)
    # tolerance slightly relaxed vs exact division: the kernel uses the EUP
    # approximate reciprocal for the softmax denominator
    assert jnp.allclose(temp_pred, ref_t, atol=5e-3, rtol=5e-3), \
        float(jnp.max(jnp.abs(temp_pred - ref_t)))
    assert jnp.allclose(loss_pred, ref_l, atol=5e-3, rtol=5e-3), \
        float(jnp.max(jnp.abs(loss_pred - ref_l)))
    # softmax rows still normalize
    assert jnp.allclose(jnp.sum(temp_pred, axis=-1), 1.0, atol=1e-2)
    assert jnp.allclose(jnp.sum(loss_pred, axis=-1), 1.0, atol=1e-2)


if __name__ == "__main__":
    params = init_params(jax.random.PRNGKey(42))
    key = jax.random.PRNGKey(0)
    k1, k2 = jax.random.split(key)
    _check(batch=8, key=k1, params=params)   # small, sublane-aligned batch
    _check(batch=5, key=k2, params=params)   # odd batch (full-array sublane tile)
    print("KERNEL_OK")
</pallas_src>

<mosaic_0001>
module attributes {stable_mosaic.version = 11 : i64} {
  func.func @heat_therapy_kernel(%arg0: i32, %arg1: memref<8x4xf32, #tpu.memory_space<vmem>>, %arg2: memref<4x22xf32, #tpu.memory_space<vmem>>, %arg3: memref<1x22xf32, #tpu.memory_space<vmem>>, %arg4: memref<22x128xf32, #tpu.memory_space<vmem>>, %arg5: memref<1x128xf32, #tpu.memory_space<vmem>>, %arg6: memref<128x6xf32, #tpu.memory_space<vmem>>, %arg7: memref<4x6xf32, #tpu.memory_space<vmem>>, %arg8: memref<1x6xf32, #tpu.memory_space<vmem>>, %arg9: memref<6x384xf32, #tpu.memory_space<vmem>>, %arg10: memref<1x384xf32, #tpu.memory_space<vmem>>, %arg11: memref<8x128xf32, #tpu.memory_space<vmem>>, %arg12: memref<3x8x128xf32, #tpu.memory_space<vmem>>) attributes {dimension_semantics = [#tpu.dimension_semantics<parallel>], iteration_bounds = array<i64: 1>, scalar_prefetch = 0 : i64, scratch_operands = 0 : i64, tpu.core_type = #tpu.core_type<tc>, window_params = [{transform_indices = @transform_0, window_bounds = array<i64: 8, 4>}, {pipeline_mode = #tpu.pipeline_mode<synchronous>, transform_indices = @transform_1, window_bounds = array<i64: 4, 22>}, {pipeline_mode = #tpu.pipeline_mode<synchronous>, transform_indices = @transform_2, window_bounds = array<i64: 1, 22>}, {pipeline_mode = #tpu.pipeline_mode<synchronous>, transform_indices = @transform_3, window_bounds = array<i64: 22, 128>}, {pipeline_mode = #tpu.pipeline_mode<synchronous>, transform_indices = @transform_4, window_bounds = array<i64: 1, 128>}, {pipeline_mode = #tpu.pipeline_mode<synchronous>, transform_indices = @transform_5, window_bounds = array<i64: 128, 6>}, {pipeline_mode = #tpu.pipeline_mode<synchronous>, transform_indices = @transform_6, window_bounds = array<i64: 4, 6>}, {pipeline_mode = #tpu.pipeline_mode<synchronous>, transform_indices = @transform_7, window_bounds = array<i64: 1, 6>}, {pipeline_mode = #tpu.pipeline_mode<synchronous>, transform_indices = @transform_8, window_bounds = array<i64: 6, 384>}, {pipeline_mode = #tpu.pipeline_mode<synchronous>, transform_indices = @transform_9, window_bounds = array<i64: 1, 384>}, {transform_indices = @transform_10, window_bounds = array<i64: 8, 128>}, {transform_indices = @transform_11, window_bounds = array<i64: 3, 8, 128>}]} {
    %c0 = arith.constant 0 : index
    %c0_0 = arith.constant 0 : index
    %0 = vector.load %arg1[%c0, %c0_0] : memref<8x4xf32, #tpu.memory_space<vmem>>, vector<8x4xf32>
    %c0_1 = arith.constant 0 : index
    %c0_2 = arith.constant 0 : index
    %1 = vector.load %arg2[%c0_1, %c0_2] : memref<4x22xf32, #tpu.memory_space<vmem>>, vector<4x22xf32>
    %cst = arith.constant dense<0.000000e+00> : vector<8x22xf32>
    %2 = tpu.matmul %0, %1, %cst {dimension_numbers = #tpu.dot_dimension_numbers<[1], [0], [0], [1], [0, 0, 1, 1], [], []>} : vector<8x4xf32>, vector<4x22xf32>, vector<8x22xf32> -> vector<8x22xf32>
    %c0_3 = arith.constant 0 : index
    %c0_4 = arith.constant 0 : index
    %3 = vector.load %arg3[%c0_3, %c0_4] : memref<1x22xf32, #tpu.memory_space<vmem>>, vector<1x22xf32>
    %4 = vector.broadcast %3 : vector<1x22xf32> to vector<8x22xf32>
    %5 = arith.addf %2, %4 : vector<8x22xf32>
    %cst_5 = arith.constant 0.000000e+00 : f32
    %6 = vector.broadcast %cst_5 : f32 to vector<8x22xf32>
    %7 = arith.maximumf %5, %6 : vector<8x22xf32>
    %c0_6 = arith.constant 0 : index
    %c0_7 = arith.constant 0 : index
    %8 = vector.load %arg4[%c0_6, %c0_7] : memref<22x128xf32, #tpu.memory_space<vmem>>, vector<22x128xf32>
    %cst_8 = arith.constant dense<0.000000e+00> : vector<8x128xf32>
    %9 = tpu.matmul %7, %8, %cst_8 {dimension_numbers = #tpu.dot_dimension_numbers<[1], [0], [0], [1], [0, 0, 1, 1], [], []>} : vector<8x22xf32>, vector<22x128xf32>, vector<8x128xf32> -> vector<8x128xf32>
    %c0_9 = arith.constant 0 : index
    %c0_10 = arith.constant 0 : index
    %10 = vector.load %arg5[%c0_9, %c0_10] : memref<1x128xf32, #tpu.memory_space<vmem>>, vector<1x128xf32>
    %11 = vector.broadcast %10 : vector<1x128xf32> to vector<8x128xf32>
    %12 = arith.addf %9, %11 : vector<8x128xf32>
    %cst_11 = arith.constant dense<0xFF800000> : vector<8xf32>
    %13 = vector.multi_reduction <maximumf>, %12, %cst_11 [1] : vector<8x128xf32> to vector<8xf32>
    %14 = vector.shape_cast %13 : vector<8xf32> to vector<8x1xf32>
    %15 = vector.broadcast %14 : vector<8x1xf32> to vector<8x128xf32>
    %16 = arith.subf %12, %15 : vector<8x128xf32>
    %17 = math.exp %16 : vector<8x128xf32>
    %cst_12 = arith.constant dense<0.000000e+00> : vector<8xf32>
    %18 = vector.multi_reduction <add>, %17, %cst_12 [1] : vector<8x128xf32> to vector<8xf32>
    %19 = vector.shape_cast %18 : vector<8xf32> to vector<8x1xf32>
    %20 = tpu.reciprocal %19 {approx = true} : vector<8x1xf32> -> vector<8x1xf32>
    %21 = vector.broadcast %20 : vector<8x1xf32> to vector<8x128xf32>
    %22 = arith.mulf %17, %21 : vector<8x128xf32>
    %c0_13 = arith.constant 0 : index
    %c0_14 = arith.constant 0 : index
    %23 = vector.load %arg11[%c0_13, %c0_14] : memref<8x128xf32, #tpu.memory_space<vmem>>, vector<8x128xf32>
    tpu.vector_store %arg11[%c0_13, %c0_14], %22 {strides = array<i32>} : memref<8x128xf32, #tpu.memory_space<vmem>>, vector<8x128xf32>,
    %c0_15 = arith.constant 0 : index
    %c0_16 = arith.constant 0 : index
    %24 = vector.load %arg6[%c0_15, %c0_16] : memref<128x6xf32, #tpu.memory_space<vmem>>, vector<128x6xf32>
    %cst_17 = arith.constant dense<0.000000e+00> : vector<8x6xf32>
    %25 = tpu.matmul %22, %24, %cst_17 {dimension_numbers = #tpu.dot_dimension_numbers<[1], [0], [0], [1], [0, 0, 1, 1], [], []>} : vector<8x128xf32>, vector<128x6xf32>, vector<8x6xf32> -> vector<8x6xf32>
    %c0_18 = arith.constant 0 : index
    %c0_19 = arith.constant 0 : index
    %26 = vector.load %arg7[%c0_18, %c0_19] : memref<4x6xf32, #tpu.memory_space<vmem>>, vector<4x6xf32>
    %cst_20 = arith.constant dense<0.000000e+00> : vector<8x6xf32>
    %27 = tpu.matmul %0, %26, %cst_20 {dimension_numbers = #tpu.dot_dimension_numbers<[1], [0], [0], [1], [0, 0, 1, 1], [], []>} : vector<8x4xf32>, vector<4x6xf32>, vector<8x6xf32> -> vector<8x6xf32>
    %28 = arith.addf %25, %27 : vector<8x6xf32>
    %c0_21 = arith.constant 0 : index
    %c0_22 = arith.constant 0 : index
    %29 = vector.load %arg8[%c0_21, %c0_22] : memref<1x6xf32, #tpu.memory_space<vmem>>, vector<1x6xf32>
    %30 = vector.broadcast %29 : vector<1x6xf32> to vector<8x6xf32>
    %31 = arith.addf %28, %30 : vector<8x6xf32>
    %cst_23 = arith.constant 0.000000e+00 : f32
    %32 = vector.broadcast %cst_23 : f32 to vector<8x6xf32>
    %33 = arith.maximumf %31, %32 : vector<8x6xf32>
    %c0_24 = arith.constant 0 : index
    %c0_25 = arith.constant 0 : index
    %34 = vector.load %arg9[%c0_24, %c0_25] : memref<6x384xf32, #tpu.memory_space<vmem>>, vector<6x384xf32>
    %cst_26 = arith.constant dense<0.000000e+00> : vector<8x384xf32>
    %35 = tpu.matmul %33, %34, %cst_26 {dimension_numbers = #tpu.dot_dimension_numbers<[1], [0], [0], [1], [0, 0, 1, 1], [], []>} : vector<8x6xf32>, vector<6x384xf32>, vector<8x384xf32> -> vector<8x384xf32>
    %c0_27 = arith.constant 0 : index
    %c0_28 = arith.constant 0 : index
    %36 = vector.load %arg10[%c0_27, %c0_28] : memref<1x384xf32, #tpu.memory_space<vmem>>, vector<1x384xf32>
    %37 = vector.broadcast %36 : vector<1x384xf32> to vector<8x384xf32>
    %38 = arith.addf %35, %37 : vector<8x384xf32>
    %39 = vector.extract_strided_slice %38 {offsets = [0, 0], sizes = [8, 128], strides = [1, 1]} : vector<8x384xf32> to vector<8x128xf32>
    %cst_29 = arith.constant dense<0xFF800000> : vector<8xf32>
    %40 = vector.multi_reduction <maximumf>, %39, %cst_29 [1] : vector<8x128xf32> to vector<8xf32>
    %41 = vector.shape_cast %40 : vector<8xf32> to vector<8x1xf32>
    %42 = vector.broadcast %41 : vector<8x1xf32> to vector<8x128xf32>
    %43 = arith.subf %39, %42 : vector<8x128xf32>
    %44 = math.exp %43 : vector<8x128xf32>
    %cst_30 = arith.constant dense<0.000000e+00> : vector<8xf32>
    %45 = vector.multi_reduction <add>, %44, %cst_30 [1] : vector<8x128xf32> to vector<8xf32>
    %46 = vector.shape_cast %45 : vector<8xf32> to vector<8x1xf32>
    %47 = tpu.reciprocal %46 {approx = true} : vector<8x1xf32> -> vector<8x1xf32>
    %48 = vector.broadcast %47 : vector<8x1xf32> to vector<8x128xf32>
    %49 = arith.mulf %44, %48 : vector<8x128xf32>
    %c0_31 = arith.constant 0 : index
    %c0_32 = arith.constant 0 : index
    %c0_33 = arith.constant 0 : index
    %50 = vector.load %arg12[%c0_31, %c0_32, %c0_33] : memref<3x8x128xf32, #tpu.memory_space<vmem>>, vector<1x8x128xf32>
    %51 = vector.shape_cast %50 : vector<1x8x128xf32> to vector<8x128xf32>
    %52 = vector.shape_cast %49 : vector<8x128xf32> to vector<1x8x128xf32>
    tpu.vector_store %arg12[%c0_31, %c0_32, %c0_33], %52 {strides = array<i32>} : memref<3x8x128xf32, #tpu.memory_space<vmem>>, vector<1x8x128xf32>,
    %53 = vector.extract_strided_slice %38 {offsets = [0, 128], sizes = [8, 128], strides = [1, 1]} : vector<8x384xf32> to vector<8x128xf32>
    %cst_34 = arith.constant dense<0xFF800000> : vector<8xf32>
    %54 = vector.multi_reduction <maximumf>, %53, %cst_34 [1] : vector<8x128xf32> to vector<8xf32>
    %55 = vector.shape_cast %54 : vector<8xf32> to vector<8x1xf32>
    %56 = vector.broadcast %55 : vector<8x1xf32> to vector<8x128xf32>
    %57 = arith.subf %53, %56 : vector<8x128xf32>
    %58 = math.exp %57 : vector<8x128xf32>
    %cst_35 = arith.constant dense<0.000000e+00> : vector<8xf32>
    %59 = vector.multi_reduction <add>, %58, %cst_35 [1] : vector<8x128xf32> to vector<8xf32>
    %60 = vector.shape_cast %59 : vector<8xf32> to vector<8x1xf32>
    %61 = tpu.reciprocal %60 {approx = true} : vector<8x1xf32> -> vector<8x1xf32>
    %62 = vector.broadcast %61 : vector<8x1xf32> to vector<8x128xf32>
    %63 = arith.mulf %58, %62 : vector<8x128xf32>
    %c1 = arith.constant 1 : index
    %c0_36 = arith.constant 0 : index
    %c0_37 = arith.constant 0 : index
    %64 = vector.load %arg12[%c1, %c0_36, %c0_37] : memref<3x8x128xf32, #tpu.memory_space<vmem>>, vector<1x8x128xf32>
    %65 = vector.shape_cast %64 : vector<1x8x128xf32> to vector<8x128xf32>
    %66 = vector.shape_cast %63 : vector<8x128xf32> to vector<1x8x128xf32>
    tpu.vector_store %arg12[%c1, %c0_36, %c0_37], %66 {strides = array<i32>} : memref<3x8x128xf32, #tpu.memory_space<vmem>>, vector<1x8x128xf32>,
    %67 = vector.extract_strided_slice %38 {offsets = [0, 256], sizes = [8, 128], strides = [1, 1]} : vector<8x384xf32> to vector<8x128xf32>
    %cst_38 = arith.constant dense<0xFF800000> : vector<8xf32>
    %68 = vector.multi_reduction <maximumf>, %67, %cst_38 [1] : vector<8x128xf32> to vector<8xf32>
    %69 = vector.shape_cast %68 : vector<8xf32> to vector<8x1xf32>
    %70 = vector.broadcast %69 : vector<8x1xf32> to vector<8x128xf32>
    %71 = arith.subf %67, %70 : vector<8x128xf32>
    %72 = math.exp %71 : vector<8x128xf32>
    %cst_39 = arith.constant dense<0.000000e+00> : vector<8xf32>
    %73 = vector.multi_reduction <add>, %72, %cst_39 [1] : vector<8x128xf32> to vector<8xf32>
    %74 = vector.shape_cast %73 : vector<8xf32> to vector<8x1xf32>
    %75 = tpu.reciprocal %74 {approx = true} : vector<8x1xf32> -> vector<8x1xf32>
    %76 = vector.broadcast %75 : vector<8x1xf32> to vector<8x128xf32>
    %77 = arith.mulf %72, %76 : vector<8x128xf32>
    %c2 = arith.constant 2 : index
    %c0_40 = arith.constant 0 : index
    %c0_41 = arith.constant 0 : index
    %78 = vector.load %arg12[%c2, %c0_40, %c0_41] : memref<3x8x128xf32, #tpu.memory_space<vmem>>, vector<1x8x128xf32>
    %79 = vector.shape_cast %78 : vector<1x8x128xf32> to vector<8x128xf32>
    %80 = vector.shape_cast %77 : vector<8x128xf32> to vector<1x8x128xf32>
    tpu.vector_store %arg12[%c2, %c0_40, %c0_41], %80 {strides = array<i32>} : memref<3x8x128xf32, #tpu.memory_space<vmem>>, vector<1x8x128xf32>,
    return
  }
  func.func @transform_0(%arg0: i32) -> (i32, i32) {
    %c0_i32 = arith.constant 0 : i32
    %c0_i32_0 = arith.constant 0 : i32
    return %arg0, %c0_i32 : i32, i32
  }
  func.func @transform_1(%arg0: i32) -> (i32, i32) {
    %c0_i32 = arith.constant 0 : i32
    %c0_i32_0 = arith.constant 0 : i32
    %c0_i32_1 = arith.constant 0 : i32
    return %c0_i32, %c0_i32_0 : i32, i32
  }
  func.func @transform_2(%arg0: i32) -> (i32, i32) {
    %c0_i32 = arith.constant 0 : i32
    %c0_i32_0 = arith.constant 0 : i32
    %c0_i32_1 = arith.constant 0 : i32
    return %c0_i32, %c0_i32_0 : i32, i32
  }
  func.func @transform_3(%arg0: i32) -> (i32, i32) {
    %c0_i32 = arith.constant 0 : i32
    %c0_i32_0 = arith.constant 0 : i32
    %c0_i32_1 = arith.constant 0 : i32
    return %c0_i32, %c0_i32_0 : i32, i32
  }
  func.func @transform_4(%arg0: i32) -> (i32, i32) {
    %c0_i32 = arith.constant 0 : i32
    %c0_i32_0 = arith.constant 0 : i32
    %c0_i32_1 = arith.constant 0 : i32
    return %c0_i32, %c0_i32_0 : i32, i32
  }
  func.func @transform_5(%arg0: i32) -> (i32, i32) {
    %c0_i32 = arith.constant 0 : i32
    %c0_i32_0 = arith.constant 0 : i32
    %c0_i32_1 = arith.constant 0 : i32
    return %c0_i32, %c0_i32_0 : i32, i32
  }
  func.func @transform_6(%arg0: i32) -> (i32, i32) {
    %c0_i32 = arith.constant 0 : i32
    %c0_i32_0 = arith.constant 0 : i32
    %c0_i32_1 = arith.constant 0 : i32
    return %c0_i32, %c0_i32_0 : i32, i32
  }
  func.func @transform_7(%arg0: i32) -> (i32, i32) {
    %c0_i32 = arith.constant 0 : i32
    %c0_i32_0 = arith.constant 0 : i32
    %c0_i32_1 = arith.constant 0 : i32
    return %c0_i32, %c0_i32_0 : i32, i32
  }
  func.func @transform_8(%arg0: i32) -> (i32, i32) {
    %c0_i32 = arith.constant 0 : i32
    %c0_i32_0 = arith.constant 0 : i32
    %c0_i32_1 = arith.constant 0 : i32
    return %c0_i32, %c0_i32_0 : i32, i32
  }
  func.func @transform_9(%arg0: i32) -> (i32, i32) {
    %c0_i32 = arith.constant 0 : i32
    %c0_i32_0 = arith.constant 0 : i32
    %c0_i32_1 = arith.constant 0 : i32
    return %c0_i32, %c0_i32_0 : i32, i32
  }
  func.func @transform_10(%arg0: i32) -> (i32, i32) {
    %c0_i32 = arith.constant 0 : i32
    %c0_i32_0 = arith.constant 0 : i32
    return %arg0, %c0_i32 : i32, i32
  }
  func.func @transform_11(%arg0: i32) -> (i32, i32, i32) {
    %c0_i32 = arith.constant 0 : i32
    %c0_i32_0 = arith.constant 0 : i32
    %c0_i32_1 = arith.constant 0 : i32
    return %c0_i32, %arg0, %c0_i32_0 : i32, i32, i32
  }
}

</mosaic_0001>

<bundles_post_ra>
// kernel: heat_therapy_forward.1
= control target key start
LH: loop header
LB: loop body
LE: loop exit
PB: predicated region body
PF: predicated region fallthrough
CT: control target
= control target key end

     0   :  { %vm48_vm0 = vcmask 1043456   ;;  %vm44_vm1 = vcmask 31744   ;;  %s546_s0 = inlined_call_operand.vmem [shape: f32[8,4], index: 0, kind: input, shape index: {}]   ;;  %s547_s1 = inlined_call_operand.vmem [shape: f32[4,22], index: 1, kind: input, shape index: {}]   ;;  %s548_s2 = inlined_call_operand.vmem [shape: f32[1,22], index: 2, kind: input, shape index: {}]   ;;  %s549_s3 = inlined_call_operand.vmem [shape: f32[22,128], index: 3, kind: input, shape index: {}]   ;;  %s550_s4 = inlined_call_operand.vmem [shape: f32[1,128], index: 4, kind: input, shape index: {}]   ;;  %s551_s5 = inlined_call_operand.vmem [shape: f32[128,6], index: 5, kind: input, shape index: {}]   ;;  %s552_s6 = inlined_call_operand.vmem [shape: f32[4,6], index: 6, kind: input, shape index: {}]   ;;  %s553_s7 = inlined_call_operand.vmem [shape: f32[1,6], index: 7, kind: input, shape index: {}]   ;;  %s554_s8 = inlined_call_operand.vmem [shape: f32[6,384], index: 8, kind: input, shape index: {}]   ;;  %s555_s9 = inlined_call_operand.vmem [shape: f32[1,384], index: 9, kind: input, shape index: {}]   ;;  %s556_s10 = inlined_call_operand.vmem [shape: f32[8,128], index: 10, kind: output, shape index: {0}]   ;;  %s557_s11 = inlined_call_operand.hbm [shape: f32[3,8,128], index: 11, kind: output, shape index: {1}]  }
   0x1   :  { %v39_v0 = vld [vmem:[%s547_s1] sm:$0xf] }
   0x2   :  { %v38_v1 = vld [vmem:[%s546_s0] sm:$0xff]  ;;  %322 = vmatpush.msk.msra.mxu0 %vm48_vm0, %v39_v0 }
   0x3   :  { %323 = vmatmul.msk.f32.vlgmr.msra.gmra.mxu0 %vm44_vm1, %v38_v1 }
   0x4   :  { %17 = vsyncpa [#allocation3], 0  ;;  %v75_v2 = vld [vmem:[%s549_s3 + $0x10] sm:$0x3f]  ;;  %vm84_vm2 = vcmask 1045504   ;;  %v74_v3 = vld [vmem:[%s549_s3 + $0x8] sm:$0xff] }
   0x5   :  { %324 = vmatpush.msk.msra.mxu1 %vm84_vm2, %v75_v2  ;;  %v73_v4 = vld [vmem:[%s549_s3] sm:$0xff]  ;;  %vm80_vm3 = vcmask 179200   ;;  %v133_v12 = vld [vmem:[%s551_s5 + $0x78] sm:$0xff]  ;;  %v132_v13 = vld [vmem:[%s551_s5 + $0x70] sm:$0xff]  ;;  %vm195_vm4 = vcmask 48128   ;;  %s308_s25 = sshll.u32 %s557_s11, 4  ;;  %s309_s25 = int_to_ptr.hbm [resolvable:$true] %s308_s25 }
   0x6   :  { %v337_v5 = vld [vmem:[%s548_s2] ss:$0 sm:$0xff]  ;;  %158 = vmatpush.msra.mxu3 %v133_v12  ;;  %v131_v14 = vld [vmem:[%s551_s5 + $0x68] sm:$0xff]  ;;  %v129_v16 = vld [vmem:[%s551_s5 + $0x58] sm:$0xff]  ;;  %s383_s26 = smov 128   ;;  %s384_s27 = smov 8  }
   0x7   :  { %102 = vmatpush.msra.mxu1 %v74_v3  ;;  %v338_v9 = vld [vmem:[%s550_s4] ss:$0 sm:$0xff]  ;;  %v128_v17 = vld [vmem:[%s551_s5 + $0x50] sm:$0xff]  ;;  %v127_v18 = vld [vmem:[%s551_s5 + $0x48] sm:$0xff] }
   0x8   :  { %159 = vmatpush.msra.mxu3 %v132_v13  ;;  %v130_v15 = vld [vmem:[%s551_s5 + $0x60] sm:$0xff]  ;;  %v125_v20 = vld [vmem:[%s551_s5 + $0x38] sm:$0xff]  ;;  %v124_v21 = vld [vmem:[%s551_s5 + $0x30] sm:$0xff] }
   0x9   :  { %103 = vmatpush.msra.mxu1 %v73_v4  ;;  %v126_v19 = vld [vmem:[%s551_s5 + $0x40] sm:$0xff]  ;;  %v123_v22 = vld [vmem:[%s551_s5 + $0x28] sm:$0xff]  ;;  %v121_v28 = vld [vmem:[%s551_s5 + $0x18] sm:$0xff] }
   0xa   :  { %160 = vmatpush.msra.mxu3 %v131_v14  ;;  %v122_v27 = vld [vmem:[%s551_s5 + $0x20] sm:$0xff]  ;;  %v120_v29 = vld [vmem:[%s551_s5 + $0x10] sm:$0xff]  ;;  %v119_v31 = vld [vmem:[%s551_s5 + $0x8] sm:$0xff] }
   0xb   :  { %v134_v30 = vld [vmem:[%s552_s6] sm:$0xf]  ;;  %v185_v37 = vld [vmem:[%s554_s8 + $0x8] sm:$0x3f]  ;;  %v186_v38 = vld [vmem:[%s554_s8 + $0x10] sm:$0x3f] }
   0xc   :  { %161 = vmatpush.msra.mxu3 %v130_v15  ;;  %326 = vmatpush.msk.msra.mxu2 %vm48_vm0, %v134_v30  ;;  %v118_v32 = vld [vmem:[%s551_s5] sm:$0xff] }
   0xd   :  { %327 = vmatmul.msk.f32.vlgmr.msra.gmra.mxu2 %vm44_vm1, %v38_v1  ;;  %v184_v33 = vld [vmem:[%s554_s8] sm:$0x3f]  ;;  %332 = vmatpush.msk.msrb.mxu1 %vm84_vm2, %v186_v38 }
   0xe   :  { %162 = vmatpush.msra.mxu3 %v129_v16  ;;  %328 = vmatpush.msk.msrb.mxu0 %vm84_vm2, %v184_v33  ;;  %v339_v40 = vld [vmem:[%s553_s7] ss:$0 sm:$0xff]  ;;  %s382_s7 = smov [#allocation2]  }
   0xf   :  { %330 = vmatpush.msk.msrb.mxu2 %vm84_vm2, %v185_v37  ;;  %v187_v45 = vld [vmem:[%s555_s9] sm:$0x7]  ;;  %s306_s8 = sshll.u32 %s382_s7, 4  ;;  %s307_s8 = int_to_ptr.vmem [resolvable:$true] %s306_s8 }
  0x10   :  { %163 = vmatpush.msra.mxu3 %v128_v17  ;;  %v189_v46 = vperm.slane %v187_v45, 0  ;;  %v191_v47 = vperm.slane %v187_v45, 2  ;;  %v190_v52 = vperm.slane %v187_v45, 1 }
  0x12   :  { %164 = vmatpush.msra.mxu3 %v127_v18 }
  0x14   :  { %165 = vmatpush.msra.mxu3 %v126_v19 }
  0x16   :  { %166 = vmatpush.msra.mxu3 %v125_v20 }
  0x18   :  { %167 = vmatpush.msra.mxu3 %v124_v21 }
  0x1a   :  { %168 = vmatpush.msra.mxu3 %v123_v22 }
  0x1c   :  { %169 = vmatpush.msra.mxu3 %v122_v27 }
  0x1e   :  { %170 = vmatpush.msra.mxu3 %v121_v28 }
  0x20   :  { %171 = vmatpush.msra.mxu3 %v120_v29 }
  0x22   :  { %172 = vmatpush.msra.mxu3 %v119_v31 }
  0x24   :  { %173 = vmatpush.msra.mxu3 %v118_v32 }
  0x80   :  { %v69_v6 = vpop.f32.mrf.mxu0 }
  0x81   :  { %v70_v7 = vadd.f32 %v337_v5, %v69_v6 }
  0x83   :  { %v72_v8 = vmax.f32 %v70_v7, 0.0 }
  0x85   :  { %325 = vmatmul.msk.f32.vlgmr.msra.gmra.mxu1 %vm80_vm3, %v72_v8 }
  0x90   :  { %v155_v39 = vpop.f32.mrf.mxu2 }
 0x102   :  { %v105_v10 = vpop.f32.mrf.mxu1 }
 0x103   :  { %v106_v11 = vadd.f32 %v338_v9, %v105_v10 }
 0x105   :  { %108 = vmax.xlane.f32.xlu0 %v106_v11 }
 0x178   :  { %v109_v23 = vpop.xlane.xlu0 %108 }
 0x179   :  { %v110_v24 = vsub.f32 %v106_v11, %v109_v23 }
 0x17b   :  { %v111_v25 = vmul.f32 1.442695, %v110_v24 }
 0x17d   :  { %340 = vpow2.f32 %v111_v25 }
 0x183   :  { %v341_v26 = vpop.eup %340 }
 0x184   :  { %113 = vadd.xlane.f32.xlu0 %v341_v26 }
 0x1f7   :  { %v114_v34 = vpop.xlane.xlu0 %113 }
 0x1f8   :  { %342 = vrcp.f32 %v114_v34 }
 0x1fe   :  { %v343_v35 = vpop.eup %342 }
 0x1ff   :  { %v116_v36 = vmul.f32 %v343_v35, %v341_v26 }
 0x201   :  { %117 = vst [vmem:[%s556_s10] sm:$0xff] %v116_v36  ;;  %174 = vmatmul.f32.vlgmr.msra.gmra.mxu3 %v116_v36 }
 0x284   :  { %v175_v41 = vpop.f32.mrf.mxu3 }
 0x285   :  { %v176_v42 = vadd.f32 %v175_v41, %v155_v39 }
 0x287   :  { %v182_v43 = vadd.f32 %v339_v40, %v176_v42 }
 0x289   :  { %v183_v44 = vmax.f32 %v182_v43, 0.0 }
 0x28b   :  { %329 = vmatmul.msk.f32.vlgmr.msrb.gmra.mxu0 %vm195_vm4, %v183_v44  ;;  %331 = vmatmul.msk.f32.vlgmr.msrb.gmra.mxu2 %vm195_vm4, %v183_v44 }
 0x28c   :  { %333 = vmatmul.msk.f32.vlgmr.msrb.gmra.mxu1 %vm195_vm4, %v183_v44 }
 0x308   :  { %v225_v48 = vpop.f32.mrf.mxu0 }
 0x309   :  { %v226_v49 = vadd.f32 %v225_v48, %v189_v46  ;;  %v265_v50 = vpop.f32.mrf.mxu1 }
 0x30a   :  { %v266_v51 = vadd.f32 %v265_v50, %v191_v47 }
 0x30b   :  { %268 = vmax.xlane.f32.xlu1 %v226_v49 }
 0x30c   :  { %289 = vmax.xlane.f32.xlu2 %v266_v51 }
 0x30e   :  { %v245_v53 = vpop.f32.mrf.mxu2 }
 0x30f   :  { %v246_v54 = vadd.f32 %v245_v53, %v190_v52 }
 0x313   :  { %278 = vmax.xlane.f32.xlu1 %v246_v54 }
 0x37e   :  { %v269_v55 = vpop.xlane.xlu1 %268 }
 0x37f   :  { %v290_v56 = vpop.xlane.xlu2 %289  ;;  %v270_v57 = vsub.f32 %v226_v49, %v269_v55 }
 0x380   :  { %v291_v58 = vsub.f32 %v266_v51, %v290_v56 }
 0x381   :  { %v271_v59 = vmul.f32 1.442695, %v270_v57 }
 0x382   :  { %v292_v60 = vmul.f32 1.442695, %v291_v58 }
 0x383   :  { %344 = vpow2.f32 %v271_v59 }
 0x384   :  { %346 = vpow2.f32 %v292_v60 }
 0x386   :  { %v279_v61 = vpop.xlane.xlu1 %278 }
 0x387   :  { %v280_v62 = vsub.f32 %v246_v54, %v279_v61 }
 0x389   :  { %v345_v63 = vpop.eup %344  ;;  %v281_v0 = vmul.f32 1.442695, %v280_v62 }
 0x38a   :  { %v347_v1 = vpop.eup %346  ;;  %273 = vadd.xlane.f32.xlu2 %v345_v63 }
 0x38b   :  { %348 = vpow2.f32 %v281_v0  ;;  %294 = vadd.xlane.f32.xlu1 %v347_v1 }
 0x391   :  { %v349_v2 = vpop.eup %348 }
 0x392   :  { %283 = vadd.xlane.f32.xlu0 %v349_v2 }
 0x3fd   :  { %v274_v3 = vpop.xlane.xlu2 %273 }
 0x3fe   :  { %350 = vrcp.f32 %v274_v3  ;;  %v295_v4 = vpop.xlane.xlu1 %294 }
 0x3ff   :  { %352 = vrcp.f32 %v295_v4 }
 0x404   :  { %v351_v5 = vpop.eup %350 }
 0x405   :  { %v353_v6 = vpop.eup %352  ;;  %v276_v7 = vmul.f32 %v351_v5, %v345_v63  ;;  %v284_v8 = vpop.xlane.xlu0 %283 }
 0x406   :  { %v297_v9 = vmul.f32 %v353_v6, %v347_v1  ;;  %354 = vrcp.f32 %v284_v8 }
 0x407   :  { %277 = vst [vmem:[#allocation2] sm:$0xff] %v276_v7 }
 0x408   :  { %299 = vst [vmem:[#allocation2 + $0x10] sm:$0xff] %v297_v9 }
 0x40c   :  { %v355_v10 = vpop.eup %354 }
 0x40d   :  { %v286_v11 = vmul.f32 %v355_v10, %v349_v2 }
 0x40f   :  { %288 = vst [vmem:[#allocation2 + $0x8] sm:$0xff] %v286_v11 }
 0x410   :  { %314 = dma.vmem_to_hbm [thread:$0]  %s307_s8, 384, %s309_s25, [#allocation3], %s383_s26, %s383_s26, %s384_s27  }
 0x411   :  { %380 = dma.done.wait [#allocation3], 384  }
 0x412   :  { %381 = vsyncadd [#allocation3], 4294966912 }
 0x413   :  { %321 = vsyncpa [#allocation3], 1 }

</bundles_post_ra>
